<compile_context>
chip_gen: v7x
topology: tpu7x:2x2x1
jax: 0.10.0
libtpu: 0.0.40
codegen_flags: <defaults>
</compile_context>

<pallas_src>
import jax
import jax.numpy as jnp
from jax.experimental import pallas as pl


def make_pos2d(num_pos_feats, temperature, max_len):
    """Replicates the buffer built in PositionalEncoding2d.__init__ (normalize=False)."""
    # TODO(synk): normalize=True branch omitted — the reference indexes a 2-D
    # tensor with 3 indices there, so it is unreachable with default normalize=False.
    x_embed = jnp.broadcast_to(
        jnp.arange(max_len, dtype=jnp.float32)[:, None], (max_len, max_len))  # [i, j] = i
    y_embed = jnp.broadcast_to(
        jnp.arange(max_len, dtype=jnp.float32)[None, :], (max_len, max_len))  # [i, j] = j

    dim_t = jnp.arange(num_pos_feats, dtype=jnp.float32)
    dim_t = jnp.asarray(temperature, jnp.float32) ** (
        2.0 * jnp.floor(dim_t / 2.0) / num_pos_feats)

    pos_x = x_embed[:, :, None] / dim_t            # (L, L, F)
    pos_y = y_embed[:, :, None] / dim_t            # (L, L, F)
    pos_x = jnp.stack((jnp.sin(pos_x[:, :, 0::2]), jnp.cos(pos_x[:, :, 1::2])),
                      axis=3).reshape(max_len, max_len, -1)
    pos_y = jnp.stack((jnp.sin(pos_y[:, :, 0::2]), jnp.cos(pos_y[:, :, 1::2])),
                      axis=3).reshape(max_len, max_len, -1)
    pos = jnp.concatenate((pos_y, pos_x), axis=2).transpose(2, 0, 1)  # (2F, L, L)
    return pos[None]                                                   # (1, 2F, L, L)


def _add_kernel(x_ref, pos_ref, o_ref):
    # Whole problem in one VMEM block: (B, C, HW) + (1, C, HW) broadcast add (VPU).
    o_ref[...] = (x_ref[...] + pos_ref[...]).astype(o_ref.dtype)


def _make_dropout_kernel(dropout_p: float):
    # Inverted dropout via integer threshold: drop iff bits < thr (P = p),
    # scale survivors by 1/(1-p).
    thr = min(int(round(dropout_p * 4294967296.0)), 4294967295)
    inv_keep = 1.0 / (1.0 - dropout_p)

    def kernel(x_ref, pos_ref, bits_ref, o_ref):
        y = x_ref[...] + pos_ref[...]
        keep = bits_ref[...] >= jnp.uint32(thr)
        o_ref[...] = jnp.where(keep, y * inv_keep, 0.0).astype(o_ref.dtype)

    return kernel


def positional_encoding_2d(x, pos2d, *, dropout_p=0.1, training=False, key=None):
    """x: (B, C, H, W), pos2d: (1, C, H, W).  Returns dropout(x + pos2d).

    Single-block pallas_call (no grid): at real feature-map scales, switch to a
    batch-"parallel" grid / tiled BlockSpecs so blocks stay within scoped VMEM.
    """
    B, C, H, W = x.shape
    HW = H * W
    x2 = x.reshape(B, C, HW)
    pos2 = pos2d.reshape(1, C, HW).astype(x.dtype)

    apply_dropout = bool(training) and float(dropout_p) > 0.0
    if not apply_dropout:
        # Eval path: no seed/mask operands at all — pure fixed-cost add kernel.
        out = pl.pallas_call(
            _add_kernel,
            out_shape=jax.ShapeDtypeStruct((B, C, HW), x.dtype),
        )(x2, pos2)
    else:
        if key is None:
            key = jax.random.PRNGKey(0)
        bits = jax.random.bits(key, (B, C, HW), dtype=jnp.uint32)
        out = pl.pallas_call(
            _make_dropout_kernel(float(dropout_p)),
            out_shape=jax.ShapeDtypeStruct((B, C, HW), x.dtype),
        )(x2, pos2, bits)
    return out.reshape(B, C, H, W)


if __name__ == "__main__":
    # Module-implied shapes: channels = 2*num_pos_feats, spatial = max_len.
    num_pos_feats, max_len, batch = 16, 16, 2
    C = 2 * num_pos_feats  # 32

    key = jax.random.PRNGKey(0)
    xkey, dkey = jax.random.split(key)
    x = jax.random.normal(xkey, (batch, C, max_len, max_len), dtype=jnp.float32)

    pos2d = make_pos2d(num_pos_feats, 10000.0, max_len)  # (1, 32, 16, 16)

    # Eval mode (dropout = identity): must match x + pos2d.
    y_eval = positional_encoding_2d(x, pos2d, dropout_p=0.1, training=False)
    jax.block_until_ready(y_eval)
    ref_eval = x + pos2d
    assert y_eval.shape == x.shape and y_eval.dtype == x.dtype
    assert jnp.allclose(y_eval, ref_eval, atol=1e-5, rtol=1e-5), "eval-mode mismatch"

    # Training mode: deterministic given the dropout key; check against a pure-JAX
    # reference built from the same uint32 bits / threshold.
    p = 0.1
    y_train = positional_encoding_2d(x, pos2d, dropout_p=p, training=True, key=dkey)
    jax.block_until_ready(y_train)

    bits_ref = jax.random.bits(dkey, (batch, C, max_len * max_len), dtype=jnp.uint32)
    thr = jnp.uint32(min(int(round(p * 4294967296.0)), 4294967295))
    keep = (bits_ref >= thr).reshape(batch, C, max_len, max_len)
    ref_train = jnp.where(keep, (x + pos2d) * (1.0 / (1.0 - p)), 0.0)
    assert y_train.shape == x.shape and y_train.dtype == x.dtype
    assert jnp.allclose(y_train, ref_train, atol=1e-5, rtol=1e-5), "train-mode mismatch"

    print("KERNEL_OK")
</pallas_src>

<mosaic_0001>
module attributes {stable_mosaic.version = 11 : i64} {
  func.func @_add_kernel(%arg0: memref<2x32x256xf32, #tpu.memory_space<vmem>>, %arg1: memref<1x32x256xf32, #tpu.memory_space<vmem>>, %arg2: memref<2x32x256xf32, #tpu.memory_space<vmem>>) attributes {dimension_semantics = [], scalar_prefetch = 0 : i64, scratch_operands = 0 : i64, tpu.core_type = #tpu.core_type<tc>} {
    %c0 = arith.constant 0 : index
    %c0_0 = arith.constant 0 : index
    %c0_1 = arith.constant 0 : index
    %0 = vector.load %arg0[%c0, %c0_0, %c0_1] : memref<2x32x256xf32, #tpu.memory_space<vmem>>, vector<2x32x256xf32>
    %c0_2 = arith.constant 0 : index
    %c0_3 = arith.constant 0 : index
    %c0_4 = arith.constant 0 : index
    %1 = vector.load %arg1[%c0_2, %c0_3, %c0_4] : memref<1x32x256xf32, #tpu.memory_space<vmem>>, vector<1x32x256xf32>
    %2 = vector.broadcast %1 : vector<1x32x256xf32> to vector<2x32x256xf32>
    %3 = arith.addf %0, %2 : vector<2x32x256xf32>
    %c0_5 = arith.constant 0 : index
    %c0_6 = arith.constant 0 : index
    %c0_7 = arith.constant 0 : index
    %4 = vector.load %arg2[%c0_5, %c0_6, %c0_7] : memref<2x32x256xf32, #tpu.memory_space<vmem>>, vector<2x32x256xf32>
    tpu.vector_store %arg2[%c0_5, %c0_6, %c0_7], %3 {strides = array<i32>} : memref<2x32x256xf32, #tpu.memory_space<vmem>>, vector<2x32x256xf32>,
    return
  }
}

</mosaic_0001>

<bundles_post_ra>
// kernel: tpu_custom_call.1
= control target key start
LH: loop header
LB: loop body
LE: loop exit
PB: predicated region body
PF: predicated region fallthrough
CT: control target
= control target key end

     0   :  { %7 = vsyncpa [#allocation3], 0  ;;  %s256_s0 = inlined_call_operand.hbm [shape: f32[2,32,256], index: 0, kind: input, shape index: {}]   ;;  %s257_s1 = inlined_call_operand.hbm [shape: f32[1,32,256], index: 1, kind: input, shape index: {}]   ;;  %s258_s2 = inlined_call_operand.hbm [shape: f32[2,32,256], index: 2, kind: output, shape index: {}]  }
   0x1   :  { %8 = vsyncpa [#allocation6], 0 }
   0x2   :  { %9 = vsyncpa [#allocation4], 0  ;;  %s191_s9 = smov [#allocation2]   ;;  %s119_s13 = scalar_lea.hbm %s256_s0, 2048 }
   0x3   :  { %s15_s10 = sshll.u32 %s191_s9, 4  ;;  %p120_p0 = scmp.ne.s32.totalorder %s256_s0, %s119_s13  ;;  %s16_s10 = int_to_ptr.vmem [resolvable:$true] %s15_s10 }
   0x4   :  { %p123_p1 = scmp.lt.u32.totalorder %s119_s13, %s256_s0 }
   0x6   :  { %p125_p2 = pnand %p123_p1, %p120_p0 }
   0x8   :  { %128 = shalt.err (!%p125_p2)
}
   0x9   :  { %s129_s18 = scalar_lea.vmem %s16_s10, 2048  ;;  %p134_p4 = scmp.lt.s32.totalorder %s16_s10, %s16_s10 }
   0xa   :  { %p130_p3 = scmp.ne.s32.totalorder %s16_s10, %s129_s18  ;;  %p135_p5 = scmp.lt.s32.totalorder %s129_s18, %s129_s18 }
   0xc   :  { %p136_p6 = por %p135_p5, %p134_p4 }
   0xe   :  { %p137_p7 = pnand %p136_p6, %p130_p3 }
  0x10   :  { %140 = shalt.err (!%p137_p7)
}
  0x11   :  { %s192_s19 = smov 256   ;;  %s193_s20 = smov 16  }
  0x12   :  { %21 = dma.hbm_to_vmem [thread:$0]  %s256_s0, 2048, %s16_s10, [#allocation3], %s192_s19, %s192_s19, %s193_s20  }
  0x13   :  { %s194_s23 = smov [#allocation5]   ;;  %s141_s27 = scalar_lea.hbm %s257_s1, 1024 }
  0x14   :  { %s27_s24 = sshll.u32 %s194_s23, 4  ;;  %p142_p8 = scmp.ne.s32.totalorder %s257_s1, %s141_s27  ;;  %s28_s24 = int_to_ptr.vmem [resolvable:$true] %s27_s24 }
  0x15   :  { %p145_p9 = scmp.lt.u32.totalorder %s141_s27, %s257_s1 }
  0x17   :  { %p147_p10 = pnand %p145_p9, %p142_p8 }
  0x19   :  { %150 = shalt.err (!%p147_p10)
}
  0x1a   :  { %s151_s4 = scalar_lea.vmem %s28_s24, 1024  ;;  %p156_p12 = scmp.lt.s32.totalorder %s28_s24, %s28_s24 }
  0x1b   :  { %p152_p11 = scmp.ne.s32.totalorder %s28_s24, %s151_s4  ;;  %p157_p13 = scmp.lt.s32.totalorder %s151_s4, %s151_s4 }
  0x1d   :  { %p158_p0 = por %p157_p13, %p156_p12 }
  0x1f   :  { %p159_p1 = pnand %p158_p0, %p152_p11 }
  0x21   :  { %162 = shalt.err (!%p159_p1)
}
  0x22   :  { %33 = dma.hbm_to_vmem [thread:$0]  %s257_s1, 1024, %s28_s24, [#allocation6], %s192_s19, %s192_s19, %s193_s20  }
  0x23   :  { %185 = dma.done.wait [#allocation3], 2048  }
  0x24   :  { %186 = vsyncadd [#allocation3], 4294965248 }
  0x25   :  { %187 = dma.done.wait [#allocation6], 1024  }
  0x26   :  { %188 = vsyncadd [#allocation6], 4294966272  ;;  %v40_v0 = vld [vmem:[#allocation2] sm:$0xff]  ;;  %v41_v2 = vld [vmem:[#allocation2 + $0x8] sm:$0xff]  ;;  %s195_s1 = smov [#allocation7]  }
  0x27   :  { %v56_v1 = vld [vmem:[#allocation5] sm:$0xff]  ;;  %v57_v4 = vld [vmem:[#allocation5 + $0x8] sm:$0xff]  ;;  %v42_v5 = vld [vmem:[#allocation2 + $0x10] sm:$0xff]  ;;  %s101_s6 = sshll.u32 %s195_s1, 4  ;;  %s102_s6 = int_to_ptr.vmem [resolvable:$true] %s101_s6 }
  0x28   :  { %v64_v3 = vadd.f32 %v56_v1, %v40_v0  ;;  %v58_v6 = vld [vmem:[#allocation5 + $0x10] sm:$0xff]  ;;  %v65_v7 = vadd.f32 %v57_v4, %v41_v2  ;;  %v43_v9 = vld [vmem:[#allocation2 + $0x18] sm:$0xff]  ;;  %v44_v11 = vld [vmem:[#allocation2 + $0x20] sm:$0xff]  ;;  %s163_s7 = scalar_lea.vmem %s102_s6, 2048  ;;  %p168_p3 = scmp.lt.s32.totalorder %s102_s6, %s102_s6 }
  0x29   :  { %v66_v8 = vadd.f32 %v58_v6, %v42_v5  ;;  %v59_v10 = vld [vmem:[#allocation5 + $0x18] sm:$0xff]  ;;  %v60_v13 = vld [vmem:[#allocation5 + $0x20] sm:$0xff]  ;;  %v45_v14 = vld [vmem:[#allocation2 + $0x28] sm:$0xff]  ;;  %p164_p2 = scmp.ne.s32.totalorder %s102_s6, %s163_s7  ;;  %p169_p4 = scmp.lt.s32.totalorder %s163_s7, %s163_s7 }
  0x2a   :  { %80 = vst [vmem:[#allocation7] sm:$0xff] %v64_v3  ;;  %v67_v12 = vadd.f32 %v59_v10, %v43_v9  ;;  %v61_v15 = vld [vmem:[#allocation5 + $0x28] sm:$0xff]  ;;  %81 = vst [vmem:[#allocation7 + $0x8] sm:$0xff] %v65_v7  ;;  %v68_v16 = vadd.f32 %v60_v13, %v44_v11  ;;  %v46_v18 = vld [vmem:[#allocation2 + $0x30] sm:$0xff] }
  0x2b   :  { %82 = vst [vmem:[#allocation7 + $0x10] sm:$0xff] %v66_v8  ;;  %v69_v17 = vadd.f32 %v61_v15, %v45_v14  ;;  %v62_v19 = vld [vmem:[#allocation5 + $0x30] sm:$0xff]  ;;  %v47_v20 = vld [vmem:[#allocation2 + $0x38] sm:$0xff]  ;;  %v48_v23 = vld [vmem:[#allocation2 + $0x40] sm:$0xff]  ;;  %p170_p5 = por %p169_p4, %p168_p3 }
  0x2c   :  { %83 = vst [vmem:[#allocation7 + $0x18] sm:$0xff] %v67_v12  ;;  %v70_v21 = vadd.f32 %v62_v19, %v46_v18  ;;  %v63_v22 = vld [vmem:[#allocation5 + $0x38] sm:$0xff]  ;;  %v49_v24 = vld [vmem:[#allocation2 + $0x48] sm:$0xff]  ;;  %84 = vst [vmem:[#allocation7 + $0x20] sm:$0xff] %v68_v16  ;;  %v72_v26 = vadd.f32 %v56_v1, %v48_v23 }
  0x2d   :  { %85 = vst [vmem:[#allocation7 + $0x28] sm:$0xff] %v69_v17  ;;  %v71_v25 = vadd.f32 %v63_v22, %v47_v20  ;;  %v73_v27 = vadd.f32 %v57_v4, %v49_v24  ;;  %v50_v28 = vld [vmem:[#allocation2 + $0x50] sm:$0xff]  ;;  %v51_v29 = vld [vmem:[#allocation2 + $0x58] sm:$0xff]  ;;  %v52_v30 = vld [vmem:[#allocation2 + $0x60] sm:$0xff]  ;;  %p171_p6 = pnand %p170_p5, %p164_p2 }
  0x2e   :  { %86 = vst [vmem:[#allocation7 + $0x30] sm:$0xff] %v70_v21  ;;  %v74_v31 = vadd.f32 %v58_v6, %v50_v28  ;;  %v75_v32 = vadd.f32 %v59_v10, %v51_v29  ;;  %v76_v33 = vadd.f32 %v60_v13, %v52_v30  ;;  %v53_v34 = vld [vmem:[#allocation2 + $0x68] sm:$0xff]  ;;  %v54_v35 = vld [vmem:[#allocation2 + $0x70] sm:$0xff]  ;;  %v55_v36 = vld [vmem:[#allocation2 + $0x78] sm:$0xff] }
  0x2f   :  { %87 = vst [vmem:[#allocation7 + $0x38] sm:$0xff] %v71_v25  ;;  %88 = vst [vmem:[#allocation7 + $0x40] sm:$0xff] %v72_v26  ;;  %v77_v37 = vadd.f32 %v61_v15, %v53_v34  ;;  %v78_v38 = vadd.f32 %v62_v19, %v54_v35  ;;  %v79_v39 = vadd.f32 %v63_v22, %v55_v36 }
  0x30   :  { %89 = vst [vmem:[#allocation7 + $0x48] sm:$0xff] %v73_v27  ;;  %90 = vst [vmem:[#allocation7 + $0x50] sm:$0xff] %v74_v31 }
  0x31   :  { %91 = vst [vmem:[#allocation7 + $0x58] sm:$0xff] %v75_v32  ;;  %92 = vst [vmem:[#allocation7 + $0x60] sm:$0xff] %v76_v33 }
  0x32   :  { %93 = vst [vmem:[#allocation7 + $0x68] sm:$0xff] %v77_v37  ;;  %94 = vst [vmem:[#allocation7 + $0x70] sm:$0xff] %v78_v38 }
  0x33   :  { %95 = vst [vmem:[#allocation7 + $0x78] sm:$0xff] %v79_v39 }
  0x34   :  { %174 = shalt.err (!%p171_p6)
}
  0x35   :  { %s175_s10 = scalar_lea.hbm %s258_s2, 2048 }
  0x36   :  { %p176_p7 = scmp.ne.s32.totalorder %s258_s2, %s175_s10  ;;  %p179_p8 = scmp.lt.u32.totalorder %s175_s10, %s258_s2 }
  0x38   :  { %p181_p9 = pnand %p179_p8, %p176_p7 }
  0x3a   :  { %184 = shalt.err (!%p181_p9)
}
  0x3b   :  { %107 = dma.vmem_to_hbm [thread:$0]  %s102_s6, 2048, %s258_s2, [#allocation4], %s192_s19, %s192_s19, %s193_s20  }
  0x3c   :  { %189 = dma.done.wait [#allocation4], 2048  }
  0x3d   :  { %190 = vsyncadd [#allocation4], 4294965248 }
  0x3e   :  { %111 = vsyncpa [#allocation3], 1 }
  0x3f   :  { %112 = vsyncpa [#allocation6], 1 }
  0x40   :  { %113 = vsyncpa [#allocation4], 1 }

</bundles_post_ra>
